<compile_context>
chip_gen: v6e
topology: v6e:2x2x1
jax: 0.10.0
libtpu: 0.0.40
codegen_flags: <defaults>
</compile_context>

<pallas_src>
import jax
import jax.numpy as jnp
from jax.experimental import pallas as pl
from jax.experimental.pallas import tpu as pltpu

_BN_EPS = 1e-5


def _attention_gate_kernel(g_ref, x_ref, wg_ref, wx_ref, bsum_ref,
                           wpsi_ref, bpsi_ref, o_ref):
    # g_ref : (1, F_g, T)     x_ref : (1, F_l, T)      (spatial tile on lanes)
    # wg_ref: (F_int, F_g)    wx_ref: (F_int, F_l)     (BN folded in)
    # bsum_ref: (F_int, 1)    wpsi_ref: (1, F_int)     bpsi_ref: (1, 1)
    # o_ref : (1, F_l, T)
    g = g_ref[0]                       # (F_g, T)
    xv = x_ref[0]                      # (F_l, T)

    # g1 + x1 + (b_g + b_x): two MXU matmuls into a single lane-dense
    # (F_int, T) f32 accumulator.
    a = (jnp.dot(wg_ref[...], g, preferred_element_type=jnp.float32)
         + jnp.dot(wx_ref[...], xv, preferred_element_type=jnp.float32)
         + bsum_ref[...])
    a = jnp.maximum(a, 0.0)                                    # ReLU (VPU)

    # psi logits: (1, F_int) x (F_int, T) -> (1, T); exp runs on the EUP.
    logit = jnp.dot(wpsi_ref[...], a,
                    preferred_element_type=jnp.float32) + bpsi_ref[...]
    psi = 1.0 / (1.0 + jnp.exp(-logit))                        # Sigmoid, (1, T)

    # Gate the skip connection; psi broadcasts over the channel sublanes.
    o_ref[...] = (xv.astype(jnp.float32) * psi)[None].astype(o_ref.dtype)


def _fold_bn_into_conv1x1(w, b, gamma, beta, mean, var, eps=_BN_EPS):
    """Fold eval-mode BatchNorm2d into a 1x1 conv -> (Cout,Cin) weight, (Cout,) bias."""
    w2 = w.reshape(w.shape[0], w.shape[1]).astype(jnp.float32)
    scale = gamma / jnp.sqrt(var + eps)
    return scale[:, None] * w2, scale * (b - mean) + beta


def _pick_hw_tile(hw, max_tile=4096):
    """Largest lane-aligned tile (multiple of 128) dividing HW, capped at max_tile.
    Falls back to the full extent (always legal as a block) otherwise."""
    if hw % 128 != 0 or hw <= max_tile:
        return hw
    for t in range(max_tile - (max_tile % 128), 0, -128):
        if hw % t == 0:
            return t
    return hw


def attention_block_pallas(g, x, params):
    """Forward of Attention_block. BN is applied in inference (eval) mode."""
    # TODO(synk): training-mode BatchNorm2d (batch statistics + running-stat
    # updates) is not computed in-kernel; running stats are folded instead.
    N, F_g, H, W = g.shape
    Nx, F_l, Hx, Wx = x.shape
    assert (N, H, W) == (Nx, Hx, Wx)
    HW = H * W
    T = _pick_hw_tile(HW)

    wg_eff, bg_eff = _fold_bn_into_conv1x1(
        params["wg_w"], params["wg_b"], params["wg_gamma"], params["wg_beta"],
        params["wg_mean"], params["wg_var"])
    wx_eff, bx_eff = _fold_bn_into_conv1x1(
        params["wx_w"], params["wx_b"], params["wx_gamma"], params["wx_beta"],
        params["wx_mean"], params["wx_var"])
    wpsi_eff, bpsi_eff = _fold_bn_into_conv1x1(
        params["psi_w"], params["psi_b"], params["psi_gamma"], params["psi_beta"],
        params["psi_mean"], params["psi_var"])
    F_int = wg_eff.shape[0]

    # NCHW viewed as (N, C, H*W): pure contiguous reshape, spatial -> lanes.
    g3 = g.reshape(N, F_g, HW)
    x3 = x.reshape(N, F_l, HW)
    bsum = (bg_eff + bx_eff).reshape(F_int, 1).astype(jnp.float32)
    wpsi2 = wpsi_eff.reshape(1, F_int)
    bpsi2 = bpsi_eff.reshape(1, 1).astype(jnp.float32)

    flops = 2 * N * HW * F_int * (F_g + F_l + 1) + 8 * N * HW * F_int
    cost = pl.CostEstimate(
        flops=int(flops),
        transcendentals=int(N * HW),
        bytes_accessed=int(4 * (g3.size + x3.size + N * F_l * HW)))

    out3 = pl.pallas_call(
        _attention_gate_kernel,
        out_shape=jax.ShapeDtypeStruct((N, F_l, HW), x.dtype),
        grid_spec=pltpu.PrefetchScalarGridSpec(
            num_scalar_prefetch=0,
            grid=(N, HW // T),
            in_specs=[
                pl.BlockSpec((1, F_g, T), lambda b, t: (b, 0, t)),
                pl.BlockSpec((1, F_l, T), lambda b, t: (b, 0, t)),
                # Parameter blocks: constant block index -> stay VMEM-resident
                # across grid steps (no re-DMA per batch element / tile).
                pl.BlockSpec((F_int, F_g), lambda b, t: (0, 0)),
                pl.BlockSpec((F_int, F_l), lambda b, t: (0, 0)),
                pl.BlockSpec((F_int, 1), lambda b, t: (0, 0)),
                pl.BlockSpec((1, F_int), lambda b, t: (0, 0)),
                pl.BlockSpec((1, 1), lambda b, t: (0, 0)),
            ],
            out_specs=pl.BlockSpec((1, F_l, T), lambda b, t: (b, 0, t)),
        ),
        compiler_params=pltpu.CompilerParams(
            dimension_semantics=("parallel", "parallel")),  # megacore sharding
        cost_estimate=cost,
    )(g3, x3, wg_eff, wx_eff, bsum, wpsi2, bpsi2)

    return out3.reshape(N, F_l, H, W)


def attention_block_reference(g, x, params, eps=_BN_EPS):
    """Pure-JAX reference matching the PyTorch module (eval-mode BN)."""
    def conv1x1_bn(inp, w, b, gamma, beta, mean, var):
        y = jnp.einsum("oi,nihw->nohw", w.reshape(w.shape[0], w.shape[1]), inp)
        y = y + b[None, :, None, None]
        scale = gamma / jnp.sqrt(var + eps)
        return (scale[None, :, None, None] * (y - mean[None, :, None, None])
                + beta[None, :, None, None])

    g1 = conv1x1_bn(g, params["wg_w"], params["wg_b"], params["wg_gamma"],
                    params["wg_beta"], params["wg_mean"], params["wg_var"])
    x1 = conv1x1_bn(x, params["wx_w"], params["wx_b"], params["wx_gamma"],
                    params["wx_beta"], params["wx_mean"], params["wx_var"])
    a = jnp.maximum(g1 + x1, 0.0)
    psi = conv1x1_bn(a, params["psi_w"], params["psi_b"], params["psi_gamma"],
                     params["psi_beta"], params["psi_mean"], params["psi_var"])
    psi = jax.nn.sigmoid(psi)
    return x * psi


if __name__ == "__main__":
    # Small shapes consistent with the module: batch=2, F_g=F_l=4, F_int=8, 16x16.
    N, F_g, F_l, F_int, H, W = 2, 4, 4, 8, 16, 16

    key = jax.random.PRNGKey(0)
    keys = jax.random.split(key, 11)

    def conv_init(kw, kb, cout, cin):
        bound = 1.0 / (cin ** 0.5)
        w = jax.random.uniform(kw, (cout, cin, 1, 1), jnp.float32, -bound, bound)
        b = jax.random.uniform(kb, (cout,), jnp.float32, -bound, bound)
        return w, b

    def bn_init(k, c):
        k1, k2, k3, k4 = jax.random.split(k, 4)
        gamma = jax.random.uniform(k1, (c,), jnp.float32, 0.8, 1.2)
        beta = 0.1 * jax.random.normal(k2, (c,), jnp.float32)
        mean = 0.1 * jax.random.normal(k3, (c,), jnp.float32)
        var = jax.random.uniform(k4, (c,), jnp.float32, 0.5, 1.5)
        return gamma, beta, mean, var

    wg_w, wg_b = conv_init(keys[0], keys[1], F_int, F_g)
    wx_w, wx_b = conv_init(keys[2], keys[3], F_int, F_l)
    psi_w, psi_b = conv_init(keys[4], keys[5], 1, F_int)
    wg_gamma, wg_beta, wg_mean, wg_var = bn_init(keys[6], F_int)
    wx_gamma, wx_beta, wx_mean, wx_var = bn_init(keys[7], F_int)
    psi_gamma, psi_beta, psi_mean, psi_var = bn_init(keys[8], 1)

    params = dict(
        wg_w=wg_w, wg_b=wg_b, wg_gamma=wg_gamma, wg_beta=wg_beta,
        wg_mean=wg_mean, wg_var=wg_var,
        wx_w=wx_w, wx_b=wx_b, wx_gamma=wx_gamma, wx_beta=wx_beta,
        wx_mean=wx_mean, wx_var=wx_var,
        psi_w=psi_w, psi_b=psi_b, psi_gamma=psi_gamma, psi_beta=psi_beta,
        psi_mean=psi_mean, psi_var=psi_var)

    g = jax.random.normal(keys[9], (N, F_g, H, W), jnp.float32)
    x = jax.random.normal(keys[10], (N, F_l, H, W), jnp.float32)

    out = jax.block_until_ready(attention_block_pallas(g, x, params))
    ref = jax.block_until_ready(attention_block_reference(g, x, params))

    assert out.shape == (N, F_l, H, W)
    assert jnp.allclose(out, ref, atol=1e-4, rtol=1e-4), (
        "mismatch vs reference, max abs err "
        f"{float(jnp.max(jnp.abs(out - ref)))}")

    print("KERNEL_OK")
</pallas_src>

<mosaic_0001>
module attributes {stable_mosaic.version = 11 : i64} {
  func.func @_attention_gate_kernel(%arg0: i32, %arg1: i32, %arg2: memref<1x4x256xf32, #tpu.memory_space<vmem>>, %arg3: memref<1x4x256xf32, #tpu.memory_space<vmem>>, %arg4: memref<8x4xf32, #tpu.memory_space<vmem>>, %arg5: memref<8x4xf32, #tpu.memory_space<vmem>>, %arg6: memref<8x1xf32, #tpu.memory_space<vmem>>, %arg7: memref<1x8xf32, #tpu.memory_space<vmem>>, %arg8: memref<1x1xf32, #tpu.memory_space<vmem>>, %arg9: memref<1x4x256xf32, #tpu.memory_space<vmem>>) attributes {dimension_semantics = [#tpu.dimension_semantics<parallel>, #tpu.dimension_semantics<parallel>], iteration_bounds = array<i64: 2, 1>, scalar_prefetch = 0 : i64, scratch_operands = 0 : i64, tpu.core_type = #tpu.core_type<tc>, window_params = [{transform_indices = @transform_0, window_bounds = array<i64: 1, 4, 256>}, {transform_indices = @transform_1, window_bounds = array<i64: 1, 4, 256>}, {pipeline_mode = #tpu.pipeline_mode<synchronous>, transform_indices = @transform_2, window_bounds = array<i64: 8, 4>}, {pipeline_mode = #tpu.pipeline_mode<synchronous>, transform_indices = @transform_3, window_bounds = array<i64: 8, 4>}, {pipeline_mode = #tpu.pipeline_mode<synchronous>, transform_indices = @transform_4, window_bounds = array<i64: 8, 1>}, {pipeline_mode = #tpu.pipeline_mode<synchronous>, transform_indices = @transform_5, window_bounds = array<i64: 1, 8>}, {pipeline_mode = #tpu.pipeline_mode<synchronous>, transform_indices = @transform_6, window_bounds = array<i64: 1, 1>}, {transform_indices = @transform_7, window_bounds = array<i64: 1, 4, 256>}]} {
    %c0 = arith.constant 0 : index
    %c0_0 = arith.constant 0 : index
    %c0_1 = arith.constant 0 : index
    %0 = vector.load %arg2[%c0, %c0_0, %c0_1] : memref<1x4x256xf32, #tpu.memory_space<vmem>>, vector<1x4x256xf32>
    %1 = vector.shape_cast %0 : vector<1x4x256xf32> to vector<4x256xf32>
    %c0_2 = arith.constant 0 : index
    %c0_3 = arith.constant 0 : index
    %c0_4 = arith.constant 0 : index
    %2 = vector.load %arg3[%c0_2, %c0_3, %c0_4] : memref<1x4x256xf32, #tpu.memory_space<vmem>>, vector<1x4x256xf32>
    %3 = vector.shape_cast %2 : vector<1x4x256xf32> to vector<4x256xf32>
    %c0_5 = arith.constant 0 : index
    %c0_6 = arith.constant 0 : index
    %4 = vector.load %arg4[%c0_5, %c0_6] : memref<8x4xf32, #tpu.memory_space<vmem>>, vector<8x4xf32>
    %cst = arith.constant dense<0.000000e+00> : vector<8x256xf32>
    %5 = tpu.matmul %4, %1, %cst {dimension_numbers = #tpu.dot_dimension_numbers<[1], [0], [0], [1], [0, 0, 1, 1], [], []>} : vector<8x4xf32>, vector<4x256xf32>, vector<8x256xf32> -> vector<8x256xf32>
    %c0_7 = arith.constant 0 : index
    %c0_8 = arith.constant 0 : index
    %6 = vector.load %arg5[%c0_7, %c0_8] : memref<8x4xf32, #tpu.memory_space<vmem>>, vector<8x4xf32>
    %cst_9 = arith.constant dense<0.000000e+00> : vector<8x256xf32>
    %7 = tpu.matmul %6, %3, %cst_9 {dimension_numbers = #tpu.dot_dimension_numbers<[1], [0], [0], [1], [0, 0, 1, 1], [], []>} : vector<8x4xf32>, vector<4x256xf32>, vector<8x256xf32> -> vector<8x256xf32>
    %8 = arith.addf %5, %7 : vector<8x256xf32>
    %c0_10 = arith.constant 0 : index
    %c0_11 = arith.constant 0 : index
    %9 = vector.load %arg6[%c0_10, %c0_11] : memref<8x1xf32, #tpu.memory_space<vmem>>, vector<8x1xf32>
    %10 = vector.broadcast %9 : vector<8x1xf32> to vector<8x256xf32>
    %11 = arith.addf %8, %10 : vector<8x256xf32>
    %cst_12 = arith.constant 0.000000e+00 : f32
    %12 = vector.broadcast %cst_12 : f32 to vector<8x256xf32>
    %13 = arith.maximumf %11, %12 : vector<8x256xf32>
    %c0_13 = arith.constant 0 : index
    %c0_14 = arith.constant 0 : index
    %14 = vector.load %arg7[%c0_13, %c0_14] : memref<1x8xf32, #tpu.memory_space<vmem>>, vector<1x8xf32>
    %cst_15 = arith.constant dense<0.000000e+00> : vector<1x256xf32>
    %15 = tpu.matmul %14, %13, %cst_15 {dimension_numbers = #tpu.dot_dimension_numbers<[1], [0], [0], [1], [0, 0, 1, 1], [], []>} : vector<1x8xf32>, vector<8x256xf32>, vector<1x256xf32> -> vector<1x256xf32>
    %c0_16 = arith.constant 0 : index
    %c0_17 = arith.constant 0 : index
    %16 = vector.load %arg8[%c0_16, %c0_17] : memref<1x1xf32, #tpu.memory_space<vmem>>, vector<1x1xf32>
    %17 = vector.broadcast %16 : vector<1x1xf32> to vector<1x256xf32>
    %18 = arith.addf %15, %17 : vector<1x256xf32>
    %cst_18 = arith.constant 0.000000e+00 : f32
    %19 = vector.broadcast %cst_18 : f32 to vector<1x256xf32>
    %20 = arith.subf %19, %18 : vector<1x256xf32>
    %21 = math.exp %20 : vector<1x256xf32>
    %cst_19 = arith.constant 1.000000e+00 : f32
    %22 = vector.broadcast %cst_19 : f32 to vector<1x256xf32>
    %23 = arith.addf %22, %21 : vector<1x256xf32>
    %cst_20 = arith.constant 1.000000e+00 : f32
    %24 = vector.broadcast %cst_20 : f32 to vector<1x256xf32>
    %25 = arith.divf %24, %23 : vector<1x256xf32>
    %26 = vector.broadcast %25 : vector<1x256xf32> to vector<4x256xf32>
    %27 = arith.mulf %3, %26 : vector<4x256xf32>
    %28 = vector.shape_cast %27 : vector<4x256xf32> to vector<1x4x256xf32>
    %c0_21 = arith.constant 0 : index
    %c0_22 = arith.constant 0 : index
    %c0_23 = arith.constant 0 : index
    %29 = vector.load %arg9[%c0_21, %c0_22, %c0_23] : memref<1x4x256xf32, #tpu.memory_space<vmem>>, vector<1x4x256xf32>
    tpu.vector_store %arg9[%c0_21, %c0_22, %c0_23], %28 {strides = array<i32>} : memref<1x4x256xf32, #tpu.memory_space<vmem>>, vector<1x4x256xf32>,
    return
  }
  func.func @transform_0(%arg0: i32, %arg1: i32) -> (i32, i32, i32) {
    %c0_i32 = arith.constant 0 : i32
    %c0_i32_0 = arith.constant 0 : i32
    return %arg0, %c0_i32, %arg1 : i32, i32, i32
  }
  func.func @transform_1(%arg0: i32, %arg1: i32) -> (i32, i32, i32) {
    %c0_i32 = arith.constant 0 : i32
    %c0_i32_0 = arith.constant 0 : i32
    return %arg0, %c0_i32, %arg1 : i32, i32, i32
  }
  func.func @transform_2(%arg0: i32, %arg1: i32) -> (i32, i32) {
    %c0_i32 = arith.constant 0 : i32
    %c0_i32_0 = arith.constant 0 : i32
    %c0_i32_1 = arith.constant 0 : i32
    return %c0_i32, %c0_i32_0 : i32, i32
  }
  func.func @transform_3(%arg0: i32, %arg1: i32) -> (i32, i32) {
    %c0_i32 = arith.constant 0 : i32
    %c0_i32_0 = arith.constant 0 : i32
    %c0_i32_1 = arith.constant 0 : i32
    return %c0_i32, %c0_i32_0 : i32, i32
  }
  func.func @transform_4(%arg0: i32, %arg1: i32) -> (i32, i32) {
    %c0_i32 = arith.constant 0 : i32
    %c0_i32_0 = arith.constant 0 : i32
    %c0_i32_1 = arith.constant 0 : i32
    return %c0_i32, %c0_i32_0 : i32, i32
  }
  func.func @transform_5(%arg0: i32, %arg1: i32) -> (i32, i32) {
    %c0_i32 = arith.constant 0 : i32
    %c0_i32_0 = arith.constant 0 : i32
    %c0_i32_1 = arith.constant 0 : i32
    return %c0_i32, %c0_i32_0 : i32, i32
  }
  func.func @transform_6(%arg0: i32, %arg1: i32) -> (i32, i32) {
    %c0_i32 = arith.constant 0 : i32
    %c0_i32_0 = arith.constant 0 : i32
    %c0_i32_1 = arith.constant 0 : i32
    return %c0_i32, %c0_i32_0 : i32, i32
  }
  func.func @transform_7(%arg0: i32, %arg1: i32) -> (i32, i32, i32) {
    %c0_i32 = arith.constant 0 : i32
    %c0_i32_0 = arith.constant 0 : i32
    return %arg0, %c0_i32, %arg1 : i32, i32, i32
  }
}

</mosaic_0001>

<bundles_post_ra>
// kernel: tpu_custom_call.1
= control target key start
LH: loop header
LB: loop body
LE: loop exit
PB: predicated region body
PF: predicated region fallthrough
CT: control target
= control target key end

     0   :  { %s1082_s0 = inlined_call_operand.vmem [shape: f32[2,4,256], index: 0, kind: input, shape index: {}]   ;;  %s1083_s1 = inlined_call_operand.vmem [shape: f32[2,4,256], index: 1, kind: input, shape index: {}]   ;;  %s1084_s2 = inlined_call_operand.vmem [shape: f32[8,4], index: 2, kind: input, shape index: {}]   ;;  %s1085_s3 = inlined_call_operand.vmem [shape: f32[8,4], index: 3, kind: input, shape index: {}]   ;;  %s1086_s4 = inlined_call_operand.vmem [shape: f32[8,1], index: 4, kind: input, shape index: {}]   ;;  %s1087_s5 = inlined_call_operand.vmem [shape: f32[1,8], index: 5, kind: input, shape index: {}]   ;;  %s1088_s6 = inlined_call_operand.<no memory space> [shape: f32[1,1], index: 6, kind: input, shape index: {}]   ;;  %s1089_s7 = inlined_call_operand.hbm [shape: f32[2,4,256], index: 7, kind: output, shape index: {}]  }
   0x1   :  { %v12_v0 = vstv %s1088_s6 }
   0x2   :  { %13 = vst [vmem:[#allocation2] sm:$0x1] %v12_v0 }
   0x3   :  { %14 = vsyncpa [#allocation4], 0 }
   0x4   :  { %16 = vsyncpa [#allocation4 + $0x1], 0  ;;  %s962_s26 = smov 0   ;;  %s964_s27 = smov 0  }
   0x5   :  { %s966_s28 = smov 0   ;;  %s968_s29 = smov 0  }
   0x6   :  { %s970_s30 = smov 0   ;;  %s972_s8 = smov 0  }
   0x7 LB: > { %s745_s6 = sadd.s32 4294967295, %s914_s8   ;;  %s746_s9 = sadd.s32 4294967294, %s914_s8   ;;  %s914_s8 = sphi %s972_s8, %s22_s8   ;;  %s910_s30 = sphi %s970_s30, %s1096_s30   ;;  %s906_s29 = sphi %s968_s29, %s1095_s29   ;;  %s902_s28 = sphi %s966_s28, %s1094_s28   ;;  %s898_s27 = sphi %s964_s27, %s1093_s27   ;;  %s894_s26 = sphi %s962_s26, %s1092_s26  }
   0x8   : > { %s34_s10 = sadd.s32 1, %s910_s30  ;;  %s204_s11 = sadd.s32 1, %s902_s28 }
   0x9   : > { %p36_p0 = scmp.ge.s32.totalorder %s34_s10, 2  ;;  %p214_p1 = scmp.ne.s32.totalorder %s902_s28, %s898_s27 }
   0xa   : > { %p215_p2 = scmp.eq.s32.totalorder %s745_s6, 1  ;;  %p220_p3 = scmp.ne.s32.totalorder %s898_s27, %s894_s26 }
   0xb   : > { %s1098_s10 = smov (%p36_p0, %s34_s10), 0  ;;  %p221_p5 = scmp.eq.s32.totalorder %s746_s9, 1 }
   0xc   : > { %p1002_p4 = por %p215_p2, %p214_p1  ;;  %s199_s13 = ssub.s32 %s910_s30, %s1098_s10 }
   0xd   : > { %p749_p6 = scmp.ge.s32.totalorder %s914_s8, 1  ;;  %p202_p7 = scmp.eq.s32.totalorder %s199_s13, 0 }
   0xe   : > { %p1009_p8 = por %p221_p5, %p220_p3  ;;  %p280_p9 = scmp.lt.s32.totalorder %s914_s8, 3 }
   0xf   : > { %s1015_s15 = scalar_select %p202_p7, %s902_s28, %s204_s11  }
  0x10   : > { %p281_p10 = pnand %p749_p6, %p280_p9 }
  0x11   : > { %p326_p11 = scmp.lt.s32.totalorder (!%p281_p10), %s906_s29, 1  ;;  %s769_s20 = sshll.u32 (!%p281_p10), %s906_s29, 7 }
  0x12   : > { %284 = sbr.rel (%p281_p10) target bundleno = 486 (0x1e6), region = 48  ;;  %s918_s11 = smov (!%p281_p10), [#allocation3]  }
  0x13   : > { %s842_s13 = sshll.u32 (!%p281_p10), %s918_s11, 4  ;;  %s843_s13 = int_to_ptr.vmem [resolvable:$false] %s842_s13 }
  0x17   : > { %v916_v1 = vmov 0.0   ;;  %v512_v2 = vld [vmem:[%s1086_s4] sm:$0xff]  ;;  %s327_s18 = scalar_select %p326_p11, %s906_s29, 1  ;;  %v917_v3 = vmov 0   ;;  %vm356_vm0 = vcmask 1043456   ;;  %vm352_vm1 = vcmask 31744  }
  0x18   : > { %425 = vmatprep.mubr.f32.mxu0 %v916_v1  ;;  %505 = vmatprep.mubr.f32.mxu1 %v916_v1  ;;  %v523_v4 = vld [vmem:[#allocation2] sm:$0x1]  ;;  %vm533_vm2 = vcmask 64512   ;;  %v529_v23 = vlaneseq  ;;  %s844_s29 = scalar_lea.vmem %s843_s13, 256 }
  0x19   : > { %827 = vset.pattern.permute.xlu0 %v917_v3  ;;  %s767_s19 = sshll.u32 %s327_s18, 3  ;;  %v349_v9 = vld [vmem:[%s1085_s3] sm:$0xff]  ;;  %s322_s18 = sand.u32 1, %s898_s27  }
  0x1a   : > { %515 = vperm.xlu0 %827, %v512_v2   ;;  %s343_s22 = scalar_lea.vmem %s1083_s1, %s767_s19  ;;  %s333_s25 = scalar_lea.vmem %s1082_s0, %s767_s19  ;;  %v348_v10 = vld [vmem:[%s1084_s2] sm:$0xff]  ;;  %v530_v24 = vshrl.u32 %v529_v23, 7 }
  0x1b   : > { %v1028_v5 = vld [vmem:[%s343_s22] sm:$0xff]  ;;  %s750_s19 = sshll.u32 %s322_s18, 3  ;;  %s635_s6 = scalar_lea.sflag [#allocation4], %s322_s18 }
  0x1c   : > { %v346_v6 = vld [vmem:[%s333_s25] sm:$0xff]  ;;  %v351_v7 = vcombine.high %v1028_v5, %v1028_v5  ;;  %v531_v25 = vsub.s32 0, %v530_v24  ;;  %s324_s21 = scalar_lea.vmem [#allocation3], %s750_s19  ;;  %s649_s25 = scalar_lea.hbm %s1089_s7, %s769_s20 }
  0x1d   : > { %v433_v8 = vcombine.high %v346_v6, %v346_v6  ;;  %v522_v22 = vld [vmem:[%s1087_s5] sm:$0x1]  ;;  %s651_s22 = sshll.u32 %s324_s21, 4  ;;  %s652_s22 = int_to_ptr.vmem [resolvable:$true] %s651_s22 }
  0x1e   : > { %526 = vperm.xlu0 %827, %v523_v4   ;;  %755 = vmatprep.subr.msk.mxu0 %vm356_vm0, %v351_v7  ;;  %s838_s9 = scalar_lea.vmem %s652_s22, 128  ;;  %p845_p1 = scmp.lt.s32.totalorder %s652_s22, %s843_s13 }
  0x1f   : > { %758 = vmatprep.subr.msk.mxu1 %vm356_vm0, %v433_v8  ;;  %756 = vmatpush1.msk.msra.mxu0 %vm356_vm0, %v1028_v5  ;;  %p839_p12 = scmp.ne.s32.totalorder %s652_s22, %s838_s9  ;;  %p846_p2 = scmp.lt.s32.totalorder %s844_s29, %s838_s9 }
  0x20   : > { %759 = vmatpush1.msk.msra.mxu1 %vm356_vm0, %v346_v6  ;;  %757 = vmatmul.mubr.msk.f32.vlgmr.msra.gmra.mxu0 %vm352_vm1, %v349_v9 }
  0x21   : > { %760 = vmatmul.mubr.msk.f32.vlgmr.msra.gmra.mxu1 %vm352_vm1, %v348_v10  ;;  %601 = vmatprep.mubr.f32.mxu0 %v916_v1  ;;  %p840_p13 = pnand %p839_p12, %p1002_p4  ;;  %p847_p3 = por %p846_p2, %p845_p1 }
  0x23   : > { %p841_p0 = pneg %p840_p13 }
  0x25   : > { %p848_p5 = pnand %p847_p3, %p841_p0 }
  0x95   : > { %v516_v16 = vpop.permute.xlu0 %515 }
  0x99   : > { %v527_v26 = vpop.permute.xlu0 %526 }
  0x9a   : > { %v532_v27 = vrot.slane %v527_v26, %v531_v25 }
  0xe0   : > { %v427_v11 = vpop.f32.mrf.mxu0 }
  0xe1   : > { %v507_v12 = vpop.f32.mrf.mxu1 }
  0xe2   : > { %v508_v13 = vadd.f32 %v507_v12, %v427_v11  ;;  %v429_v14 = vpop.f32.mrf.mxu0 }
  0xe3   : > { %v509_v15 = vpop.f32.mrf.mxu1 }
  0xe4   : > { %v510_v17 = vadd.f32 %v509_v15, %v429_v14  ;;  %v518_v18 = vadd.f32 %v516_v16, %v508_v13 }
  0xe6   : > { %v519_v19 = vadd.f32 %v516_v16, %v510_v17  ;;  %v520_v21 = vmax.f32 %v518_v18, 0.0 }
  0xe8   : > { %v521_v20 = vmax.f32 %v519_v19, 0.0 }
  0xea   : > { %567 = vmatprep.subr.mxu0 %v521_v20 }
  0xeb   : > { %568 = vmatpush1.msra.mxu0 %v520_v21 }
  0xec   : > { %761 = vmatmul.mubr.msk.f32.vlgmr.msra.gmra.mxu0 %vm533_vm2, %v522_v22 }
 0x1ac   : > { %v603_v28 = vpop.f32.mrf.mxu0 }
 0x1ad   : > { %v604_v29 = vadd.f32 %v603_v28, %v532_v27 }
 0x1ae   : > { %v605_v30 = vpop.f32.mrf.mxu0 }
 0x1af   : > { %v608_v31 = vsub.f32 0.0, %v604_v29  ;;  %v606_v32 = vadd.f32 %v605_v30, %v532_v27 }
 0x1b1   : > { %v610_v33 = vmul.f32 1.442695, %v608_v31  ;;  %v609_v34 = vsub.f32 0.0, %v606_v32 }
 0x1b3   : > { %830 = vpow2.f32 %v610_v33  ;;  %v612_v35 = vmul.f32 1.442695, %v609_v34 }
 0x1b5   : > { %832 = vpow2.f32 %v612_v35 }
 0x1c0   : > { %v831_v36 = vpop.eup %830 }
 0x1c1   : > { %v614_v37 = vadd.f32 1.0, %v831_v36 }
 0x1c2   : > { %v833_v38 = vpop.eup %832 }
 0x1c3   : > { %834 = vrcp.f32 %v614_v37  ;;  %v615_v39 = vadd.f32 1.0, %v833_v38 }
 0x1c5   : > { %836 = vrcp.f32 %v615_v39 }
 0x1d0   : > { %v835_v40 = vpop.eup %834 }
 0x1d1   : > { %v623_v42 = vrot.slane %v835_v40, %v531_v25 }
 0x1d2   : > { %v837_v41 = vpop.eup %836 }
 0x1d3   : > { %v627_v43 = vrot.slane %v837_v41, %v531_v25 }
 0x1d5   : > { %v630_v44 = vcombine.low %v623_v42, %v627_v43 }
 0x1d7   : > { %v632_v45 = vmul.f32 %v630_v44, %v1028_v5 }
 0x1d9   : > { %633 = vst [vmem:[%s324_s21] sm:$0xff] %v632_v45 }
 0x1da   : > { %851 = shalt.err (!%p848_p5)
}
 0x1db   : > { %s852_s16 = scalar_lea.hbm %s649_s25, 128  ;;  %s856_s19 = scalar_lea.hbm %s1089_s7, 256 }
 0x1dc   : > { %p853_p6 = scmp.ne.s32.totalorder %s649_s25, %s852_s16  ;;  %p857_p10 = scmp.lt.s32.totalorder %s649_s25, %s1089_s7 }
 0x1dd   : > { %p858_p11 = scmp.lt.s32.totalorder %s856_s19, %s852_s16 }
 0x1de   : > { %p854_p7 = pnand %p853_p6, %p1002_p4 }
 0x1df   : > { %p859_p12 = por %p858_p11, %p857_p10 }
 0x1e0   : > { %p855_p9 = pneg %p854_p7 }
 0x1e2   : > { %p860_p13 = pnand %p859_p12, %p855_p9 }
 0x1e4   : > { %863 = shalt.err (!%p860_p13)
}
 0x1e5   : > { %770 = dma.vmem_to_hbm [thread:$0]  (%p1002_p4), %s652_s22, 128, %s649_s25, %s635_s6  }
 0x1e6 PF: > { %p776_p0 = scmp.ge.s32.totalorder %s914_s8, 2  ;;  %s663_s23 = sand.u32 1, %s894_s26  }
 0x1e7   : > { %s664_s24 = scalar_lea.sflag [#allocation4], %s663_s23 }
 0x1e8   : > { %p773_p1 = pnand %p776_p0, %p1009_p8 }
 0x1ea   : > { %p774_p2 = pneg %p773_p1 }
 0x1ec   : > { %889 = dma.done.wait (%p774_p2), %s664_s24, 128  }
 0x1ed   : > { %891 = vsyncadd (%p774_p2), %s664_s24, 4294967168  ;;  %s22_s8 = sadd.s32 1, %s914_s8   ;;  %s1092_s26 = smov %s898_s27 }
 0x1ee   : > { %p19_p3 = scmp.ge.s32.totalorder %s22_s8, 4   ;;  %s1093_s27 = smov %s902_s28 }
 0x1ef   : > { %s1094_s28 = smov %s1015_s15  ;;  %s1095_s29 = smov %s910_s30 }
 0x1f0   : > { %s1096_s30 = smov %s1098_s10  ;;  %21 = sbr.rel (!%p19_p3) target bundleno = 7 (0x7), region = 86 }
 0x1f5   :  { %669 = vsyncpa [#allocation4], 1 }
 0x1f6   :  { %671 = vsyncpa [#allocation4 + $0x1], 1 }

</bundles_post_ra>
